<compile_context>
chip_gen: v7x
topology: tpu7x:2x2x1
jax: 0.10.0
libtpu: 0.0.40
codegen_flags: <defaults>
</compile_context>

<pallas_src>
import jax
import jax.numpy as jnp
from jax.experimental import pallas as pl
from jax.experimental.pallas import tpu as pltpu

_LANE = 128
_SMALL_BLOCK_BYTES = 1 << 20         # <= 1 MiB: single whole-array block, no grid
_TARGET_TILE_BYTES = 8 << 20         # ~8 MiB row tiles for the pipelined copy
_UNALIGNED_TILE_BYTES = 4 << 20      # per-block budget when trailing dims get padded
_WHOLE_BLOCK_VMEM_BYTES = 32 << 20   # in+out (single-buffered) budget for whole-block path
_VMEM_LIMIT_BYTES = 48 << 20         # explicit scoped-VMEM limit; leaves headroom on v7x (64 MiB)
_MIN_GRID_STEPS = 4                  # keep >= 4 "parallel" steps so v7x's 2 TCs split the copy


def _round_up(a, b):
    return (a + b - 1) // b * b


def _sublane_pack(dtype):
    # Packed sublanes per vreg: 8 (f32/i32), 16 (bf16/f16), 32 (i8/fp8).
    itemsize = jnp.dtype(dtype).itemsize
    return 8 * max(1, 4 // max(1, itemsize))


def _identity_kernel(x_ref, o_ref):
    # Pure pass-through of the current tile.
    o_ref[...] = x_ref[...]


def _bytes_cost(x):
    nbytes = x.size * jnp.dtype(x.dtype).itemsize
    return pl.CostEstimate(flops=0, transcendentals=0, bytes_accessed=2 * nbytes)


def _whole_block_copy(x):
    # One whole-array block (no grid): block dims equal the array dims, so the
    # (8,128) divisibility rule does not apply and awkward shapes need no pad.
    return pl.pallas_call(
        _identity_kernel,
        out_shape=jax.ShapeDtypeStruct(x.shape, x.dtype),
        compiler_params=pltpu.CompilerParams(vmem_limit_bytes=_VMEM_LIMIT_BYTES),
        cost_estimate=_bytes_cost(x),
    )(x)


def _tiled_copy(x, tile0):
    # Copy `x` by tiling axis 0; trailing dims are kept whole, so trailing
    # block dims are either 128-multiples (aligned path) or full-array dims
    # (unaligned path) -- both legal.  Default 2-deep pipelining is kept;
    # extra VMEM is spent on bigger tiles instead of deeper buffering.
    n0 = x.shape[0]
    rest = tuple(x.shape[1:])
    block = (tile0,) + rest
    zeros = (0,) * len(rest)
    return pl.pallas_call(
        _identity_kernel,
        out_shape=jax.ShapeDtypeStruct(x.shape, x.dtype),
        grid=(pl.cdiv(n0, tile0),),
        in_specs=[pl.BlockSpec(block, lambda i: (i,) + zeros)],
        out_specs=pl.BlockSpec(block, lambda i: (i,) + zeros),
        compiler_params=pltpu.CompilerParams(
            dimension_semantics=("parallel",),
            vmem_limit_bytes=_VMEM_LIMIT_BYTES,
        ),
        cost_estimate=_bytes_cost(x),
    )(x)


def _padded_row_bytes(shape, dtype):
    # Approximate padded VMEM bytes per index of axis 0 for a block that keeps
    # all trailing dims whole (lane dim padded to 128, sublane dim to the pack).
    itemsize = jnp.dtype(dtype).itemsize
    sub = _sublane_pack(dtype)
    dims = shape[1:]
    if len(dims) == 0:
        return _round_up(1, _LANE) * itemsize
    if len(dims) == 1:
        return _round_up(dims[0], _LANE) * itemsize
    lead = 1
    for d in dims[:-2]:
        lead *= d
    return lead * _round_up(dims[-2], sub) * _round_up(dims[-1], _LANE) * itemsize


def identity_forward(inp, *args, **kwargs):
    """Pallas implementation of Identity.forward(inp) -> inp (materialized copy).

    If a materialized copy is not contractually required, `return inp` is the
    truly optimal implementation (zero kernels, zero bytes moved).
    """
    del args, kwargs  # Identity ignores extra arguments, like the nn.Module.
    if inp.size == 0:
        return inp

    orig_shape = inp.shape
    dtype = inp.dtype
    itemsize = jnp.dtype(dtype).itemsize
    n = inp.size
    nbytes = n * itemsize
    sub = _sublane_pack(dtype)

    if n % _LANE == 0:
        # Free (contiguous) reshape to the widest lane-dense 2-D view:
        # unmasked full-width vector stores and no VMEM lane padding.
        cols = _LANE
        for c in (4096, 2048, 1024, 512, 256, 128):
            if n % c == 0:
                cols = c
                break
        rows = n // cols
        x2d = inp.reshape(rows, cols)

        if nbytes <= _SMALL_BLOCK_BYTES or rows <= _MIN_GRID_STEPS * sub:
            # Launch-overhead regime: one whole-array block, no grid machinery.
            out = _whole_block_copy(x2d)
        else:
            # ~8 MiB row tiles amortize per-step overhead; cap the tile so the
            # 1-D "parallel" grid keeps >= _MIN_GRID_STEPS steps (v7x megacore).
            # 4 buffers (in+out, double-buffered) stay under the 48 MiB limit.
            tile_r = max(sub, (_TARGET_TILE_BYTES // (cols * itemsize)) // sub * sub)
            cap = max(sub, (rows // _MIN_GRID_STEPS) // sub * sub)
            tile_r = min(tile_r, cap, rows)
            out = _tiled_copy(x2d, tile_r)
        return out.reshape(orig_shape)

    # ---- n not a multiple of 128: never pad (pad + final slice would add two
    # extra HBM round trips).  Blocks whose trailing dims equal the full array
    # dims are exempt from the (8,128) rule, so copy directly. -----------------
    x = inp if inp.ndim >= 2 else inp.reshape(1, n)
    per_row = _padded_row_bytes(x.shape, dtype)
    sub0 = sub if x.ndim == 2 else 1  # axis 0 is a sublane axis only in 2-D

    if 2 * _round_up(x.shape[0], sub0) * per_row <= _WHOLE_BLOCK_VMEM_BYTES:
        return _whole_block_copy(x).reshape(orig_shape)

    # Large & unaligned (rare for Identity): tile over the leading axis only.
    tile0 = max(1, _UNALIGNED_TILE_BYTES // per_row)
    tile0 = min(tile0, max(1, x.shape[0] // _MIN_GRID_STEPS))
    if x.ndim == 2:
        tile0 = max(8, tile0 // 8 * 8)  # keep the sublane block dim a multiple of 8
    tile0 = min(tile0, x.shape[0])
    if 4 * _round_up(tile0, sub0) * per_row <= _VMEM_LIMIT_BYTES:
        return _tiled_copy(x, tile0).reshape(orig_shape)

    # TODO(synk): degenerate corner (enormous, non-128-divisible trailing dims):
    # fall back to one padded flat copy (costs an extra pad + slice round trip).
    pad = (-n) % _LANE
    flat = jnp.pad(inp.reshape(-1), (0, pad))
    rows = flat.size // _LANE
    tile_r = max(sub, (_TARGET_TILE_BYTES // (_LANE * itemsize)) // sub * sub)
    tile_r = min(tile_r, max(sub, (rows // _MIN_GRID_STEPS) // sub * sub), rows)
    out = _tiled_copy(flat.reshape(rows, _LANE), tile_r)
    return out.reshape(-1)[:n].reshape(orig_shape)


if __name__ == "__main__":
    key = jax.random.PRNGKey(0)
    k1, k2, k3, k4 = jax.random.split(key, 4)

    # NCHW input matching the PyTorch module's typical use: batch=2, channels=4, 16x16.
    x1 = jax.random.normal(k1, (2, 4, 16, 16), dtype=jnp.float32)
    y1 = identity_forward(x1)
    jax.block_until_ready(y1)
    assert y1.shape == x1.shape and y1.dtype == x1.dtype
    assert bool(jnp.array_equal(y1, x1)), "Identity mismatch (small aligned path)"

    # Awkward, non-128-divisible size: whole-array block path, no padding.
    x2 = jax.random.normal(k2, (3, 5, 7), dtype=jnp.float32)
    y2 = identity_forward(x2)
    jax.block_until_ready(y2)
    assert y2.shape == x2.shape and y2.dtype == x2.dtype
    assert bool(jnp.array_equal(y2, x2)), "Identity mismatch (unaligned path)"

    # ~1 MiB tensor exercises the tiled "parallel" grid path, including a
    # masked partial last row-tile (rows=65 is not a multiple of the tile).
    x3 = jax.random.normal(k3, (1040, 256), dtype=jnp.float32)
    y3 = identity_forward(x3)
    jax.block_until_ready(y3)
    assert y3.shape == x3.shape and y3.dtype == x3.dtype
    assert bool(jnp.array_equal(y3, x3)), "Identity mismatch (tiled path)"

    # bf16 sublane packing.
    x4 = jax.random.normal(k4, (4, 8, 128), dtype=jnp.bfloat16)
    y4 = identity_forward(x4)
    jax.block_until_ready(y4)
    assert y4.shape == x4.shape and y4.dtype == x4.dtype
    assert bool(jnp.array_equal(y4, x4)), "Identity mismatch (bf16 path)"

    print("KERNEL_OK")
</pallas_src>

<mosaic_0001>
module attributes {stable_mosaic.version = 11 : i64} {
  func.func @_identity_kernel(%arg0: memref<1x2048xf32, #tpu.memory_space<vmem>>, %arg1: memref<1x2048xf32, #tpu.memory_space<vmem>>) attributes {dimension_semantics = [], scalar_prefetch = 0 : i64, scratch_operands = 0 : i64, tpu.core_type = #tpu.core_type<tc>} {
    %c0 = arith.constant 0 : index
    %c0_0 = arith.constant 0 : index
    %0 = vector.load %arg0[%c0, %c0_0] : memref<1x2048xf32, #tpu.memory_space<vmem>>, vector<1x2048xf32>
    %c0_1 = arith.constant 0 : index
    %c0_2 = arith.constant 0 : index
    %1 = vector.load %arg1[%c0_1, %c0_2] : memref<1x2048xf32, #tpu.memory_space<vmem>>, vector<1x2048xf32>
    tpu.vector_store %arg1[%c0_1, %c0_2], %0 {strides = array<i32>} : memref<1x2048xf32, #tpu.memory_space<vmem>>, vector<1x2048xf32>,
    return
  }
}

</mosaic_0001>

<bundles_post_ra>
// kernel: tpu_custom_call.1
= control target key start
LH: loop header
LB: loop body
LE: loop exit
PB: predicated region body
PF: predicated region fallthrough
CT: control target
= control target key end

     0   :  { %6 = vsyncpa [#allocation3], 0  ;;  %s126_s0 = inlined_call_operand.hbm [shape: f32[1,2048], index: 0, kind: input, shape index: {}]   ;;  %s127_s1 = inlined_call_operand.hbm [shape: f32[1,2048], index: 1, kind: output, shape index: {}]  }
   0x1   :  { %7 = vsyncpa [#allocation4], 0  ;;  %s90_s6 = smov [#allocation2]   ;;  %s42_s10 = scalar_lea.hbm %s126_s0, 256 }
   0x2   :  { %s14_s7 = sshll.u32 %s90_s6, 4  ;;  %p43_p0 = scmp.ne.s32.totalorder %s126_s0, %s42_s10  ;;  %s15_s7 = int_to_ptr.vmem [resolvable:$true] %s14_s7 }
   0x3   :  { %p46_p1 = scmp.lt.u32.totalorder %s42_s10, %s126_s0 }
   0x5   :  { %p48_p2 = pnand %p46_p1, %p43_p0 }
   0x7   :  { %51 = shalt.err (!%p48_p2)
}
   0x8   :  { %s52_s15 = scalar_lea.vmem %s15_s7, 256  ;;  %p57_p4 = scmp.lt.s32.totalorder %s15_s7, %s15_s7 }
   0x9   :  { %p53_p3 = scmp.ne.s32.totalorder %s15_s7, %s52_s15  ;;  %p58_p5 = scmp.lt.s32.totalorder %s52_s15, %s52_s15 }
   0xb   :  { %p59_p6 = por %p58_p5, %p57_p4 }
   0xd   :  { %p60_p7 = pnand %p59_p6, %p53_p3 }
   0xf   :  { %63 = shalt.err (!%p60_p7)
}
  0x10   :  { %17 = dma.hbm_to_vmem [thread:$0]  %s126_s0, 256, %s15_s7, [#allocation3]  }
  0x11   :  { %86 = dma.done.wait [#allocation3], 256  }
  0x12   :  { %87 = vsyncadd [#allocation3], 4294967040  ;;  %s91_s18 = smov [#allocation5]   ;;  %v21_v0 = vld [vmem:[#allocation2] sm:$0xff]  ;;  %v22_v1 = vld [vmem:[#allocation2 + $0x8] sm:$0xff] }
  0x13   :  { %s31_s19 = sshll.u32 %s91_s18, 4  ;;  %23 = vst [vmem:[#allocation5] sm:$0xff] %v21_v0  ;;  %24 = vst [vmem:[#allocation5 + $0x8] sm:$0xff] %v22_v1  ;;  %s32_s19 = int_to_ptr.vmem [resolvable:$true] %s31_s19 }
  0x14   :  { %s64_s20 = scalar_lea.vmem %s32_s19, 256  ;;  %p69_p9 = scmp.lt.s32.totalorder %s32_s19, %s32_s19 }
  0x15   :  { %p65_p8 = scmp.ne.s32.totalorder %s32_s19, %s64_s20  ;;  %p70_p10 = scmp.lt.s32.totalorder %s64_s20, %s64_s20 }
  0x17   :  { %p71_p11 = por %p70_p10, %p69_p9 }
  0x19   :  { %p72_p12 = pnand %p71_p11, %p65_p8 }
  0x1b   :  { %75 = shalt.err (!%p72_p12)
}
  0x1c   :  { %s76_s0 = scalar_lea.hbm %s127_s1, 256 }
  0x1d   :  { %p77_p13 = scmp.ne.s32.totalorder %s127_s1, %s76_s0  ;;  %p80_p0 = scmp.lt.u32.totalorder %s76_s0, %s127_s1 }
  0x1f   :  { %p82_p1 = pnand %p80_p0, %p77_p13 }
  0x21   :  { %85 = shalt.err (!%p82_p1)
}
  0x22   :  { %34 = dma.vmem_to_hbm [thread:$0]  %s32_s19, 256, %s127_s1, [#allocation4]  }
  0x23   :  { %88 = dma.done.wait [#allocation4], 256  }
  0x24   :  { %89 = vsyncadd [#allocation4], 4294967040 }
  0x25   :  { %38 = vsyncpa [#allocation3], 1 }
  0x26   :  { %39 = vsyncpa [#allocation4], 1 }

</bundles_post_ra>
